<compile_context>
chip_gen: v6e
topology: v6e:2x2x1
jax: 0.10.0
libtpu: 0.0.40
codegen_flags: <defaults>
</compile_context>

<pallas_src>
import math

import jax
import jax.numpy as jnp
from jax.experimental import pallas as pl
from jax.experimental.pallas import tpu as pltpu

# ----------------------- model configuration (small) ------------------------
B = 2          # batch
S = 8          # seq_len
D = 32         # d_model == len(sensor_types) (required by the PyTorch broadcast)
H = 4          # n_heads
DK = D // H    # d_k
BS = B * S
SCALE = 1.0 / math.sqrt(DK)
TEMPERATURE = 1.0


def battery_attention_kernel(x_ref, w_ref, b_ref, o_ref):
    # x_ref: (BS, D)  -- batch folded into the MXU M/sublane dimension.
    # w_ref: (D, 4D)  -- [Wq*scale*imp | Wk*imp | Wv*imp | Wo], input dim on rows.
    # b_ref: (1, 4D)  -- [bq*scale | bk | bv | bo].
    x = x_ref[...]
    w = w_ref[...]
    b = b_ref[...]

    # One fused QKV projection: (16,32) @ (32,96) -> (16,96) on the MXU.
    qkv = jnp.dot(x, w[:, :3 * D], preferred_element_type=jnp.float32) + b[:, :3 * D]

    # Carve per-head DK-lane chunks out of the 96-lane slab (static lane
    # slices, land in the otherwise-idle XLU slot) and stack all heads into a
    # single (H*B, S, DK) batch so the attention math is one dependency chain.
    def gather_heads(base):
        return jnp.concatenate(
            [qkv[:, base + h * DK: base + (h + 1) * DK].reshape(B, S, DK)
             for h in range(H)],
            axis=0)                                        # (H*B, S, DK)

    q = gather_heads(0)
    k = gather_heads(D)
    v = gather_heads(2 * D)

    # One batched score matmul + ONE softmax (one max / one exp / one sum)
    # covering all heads and batch elements.
    s = jnp.einsum("nqd,nkd->nqk", q, k,
                   preferred_element_type=jnp.float32)     # (H*B, S, S)
    m = jnp.max(s, axis=-1, keepdims=True)
    e = jnp.exp(s - m)
    denom = jnp.sum(e, axis=-1, keepdims=True)

    ctx = jnp.einsum("nqk,nkd->nqd", e, v,
                     preferred_element_type=jnp.float32)   # (H*B, S, DK)
    # Deferred softmax normalization via the EUP approximate reciprocal
    # (exact divide also fine at this size; approx well within test tolerance).
    ctx = ctx * pl.reciprocal(denom, approx=True)

    # Reassemble one lane-contiguous (BS, D) context slab (head-major lanes,
    # matching torch's .transpose(1,2).view(B,S,D)) and apply a single fused
    # output projection (16,32)@(32,32).
    ctx2 = jnp.concatenate(
        [ctx[h * B:(h + 1) * B].reshape(BS, DK) for h in range(H)],
        axis=-1)                                           # (BS, D)
    out = jnp.dot(ctx2, w[:, 3 * D:], preferred_element_type=jnp.float32) + b[:, 3 * D:]
    o_ref[...] = out.astype(o_ref.dtype)


def battery_specific_attention(x, params):
    """x: (B, S, D) float32.  params: dict from pack_kernel_params()."""
    b, s, d = x.shape
    x2 = x.reshape(b * s, d)        # free metadata reshape (wrapper side)

    vmem = pl.BlockSpec(memory_space=pltpu.MemorySpace.VMEM)
    out2 = pl.pallas_call(
        battery_attention_kernel,
        out_shape=jax.ShapeDtypeStruct((b * s, d), x.dtype),
        in_specs=[vmem, vmem, vmem],      # x, packed weights, packed biases
        out_specs=vmem,                   # whole-array VMEM, no grid/pipeline
    )(x2, params["w_all"], params["b_all"])
    return out2.reshape(b, s, d)


# ------------------------- plain-JAX reference ------------------------------
# Uses the RAW (torch-layout) weights so the host-side folding/packing in
# pack_kernel_params() is also validated.
def reference(x, raw):
    xw = x * raw["imp"].reshape(1, 1, -1)                      # (B,S,D)

    def lin(z, w, bias):                                       # w is (out, in)
        return jnp.einsum("bsd,ed->bse", z, w) + bias

    q = lin(xw, raw["wq"], raw["bq"])
    k = lin(xw, raw["wk"], raw["bk"])
    v = lin(xw, raw["wv"], raw["bv"])
    qh = q.reshape(B, S, H, DK).transpose(0, 2, 1, 3)
    kh = k.reshape(B, S, H, DK).transpose(0, 2, 1, 3)
    vh = v.reshape(B, S, H, DK).transpose(0, 2, 1, 3)
    scores = jnp.einsum("bhqd,bhkd->bhqk", qh, kh) * SCALE / TEMPERATURE
    attn = jax.nn.softmax(scores, axis=-1)
    ctx = jnp.einsum("bhqk,bhkd->bhqd", attn, vh)
    ctx = ctx.transpose(0, 2, 1, 3).reshape(B, S, D)
    return lin(ctx, raw["wo"], raw["bo"])


# ------------------------- deterministic init -------------------------------
def xavier_uniform(key, fan_in, fan_out):
    a = math.sqrt(6.0 / (fan_in + fan_out))
    # torch nn.Linear weight layout is (out, in).
    return jax.random.uniform(key, (fan_out, fan_in), jnp.float32, -a, a)


def make_raw_params(key):
    ks = jax.random.split(key, 5)
    zeros = jnp.zeros((D,), jnp.float32)
    return {
        # module inits sensor_importance to ones; perturb it here so the
        # host-side fold into the QKV weights is actually exercised.
        "imp": 1.0 + 0.25 * jax.random.normal(ks[4], (D,), jnp.float32),
        "wq": xavier_uniform(ks[0], D, D), "bq": zeros,
        "wk": xavier_uniform(ks[1], D, D), "bk": zeros,
        "wv": xavier_uniform(ks[2], D, D), "bv": zeros,
        "wo": xavier_uniform(ks[3], D, D), "bo": zeros,
    }


def pack_kernel_params(raw):
    """Host-side repacking:
       * transpose torch (out,in) weights to (in,out),
       * fold sensor_importance into the input rows of Wq/Wk/Wv,
       * fold SCALE/TEMPERATURE into Wq and bq,
       * pack everything into one (D,4D) weight slab and one (1,4D) bias row.
    """
    sfac = SCALE / TEMPERATURE
    imp = raw["imp"].reshape(D, 1)

    wq_t = imp * raw["wq"].T * sfac       # (in, out), importance & scale folded
    wk_t = imp * raw["wk"].T
    wv_t = imp * raw["wv"].T
    wo_t = raw["wo"].T                    # (in=head-major ctx dims, out)

    w_all = jnp.concatenate([wq_t, wk_t, wv_t, wo_t], axis=1)            # (D, 4D)
    b_all = jnp.concatenate(
        [raw["bq"] * sfac, raw["bk"], raw["bv"], raw["bo"]]).reshape(1, 4 * D)
    return {"w_all": w_all.astype(jnp.float32),
            "b_all": b_all.astype(jnp.float32)}


if __name__ == "__main__":
    key = jax.random.PRNGKey(0)
    kx, kp = jax.random.split(key)
    x = jax.random.normal(kx, (B, S, D), jnp.float32)
    raw = make_raw_params(kp)
    params = pack_kernel_params(raw)

    out = battery_specific_attention(x, params)
    out = jax.block_until_ready(out)

    ref = reference(x, raw)
    assert out.shape == (B, S, D)
    assert jnp.allclose(out, ref, atol=2e-2, rtol=2e-2), "mismatch vs reference"

    print("KERNEL_OK")
</pallas_src>

<mosaic_0001>
module attributes {stable_mosaic.version = 11 : i64} {
  func.func @battery_attention_kernel(%arg0: memref<16x32xf32, #tpu.memory_space<vmem>>, %arg1: memref<32x128xf32, #tpu.memory_space<vmem>>, %arg2: memref<1x128xf32, #tpu.memory_space<vmem>>, %arg3: memref<16x32xf32, #tpu.memory_space<vmem>>) attributes {dimension_semantics = [], scalar_prefetch = 0 : i64, scratch_operands = 0 : i64, tpu.core_type = #tpu.core_type<tc>} {
    %c0 = arith.constant 0 : index
    %c0_0 = arith.constant 0 : index
    %0 = vector.load %arg0[%c0, %c0_0] : memref<16x32xf32, #tpu.memory_space<vmem>>, vector<16x32xf32>
    %c0_1 = arith.constant 0 : index
    %c0_2 = arith.constant 0 : index
    %1 = vector.load %arg1[%c0_1, %c0_2] : memref<32x128xf32, #tpu.memory_space<vmem>>, vector<32x128xf32>
    %c0_3 = arith.constant 0 : index
    %c0_4 = arith.constant 0 : index
    %2 = vector.load %arg2[%c0_3, %c0_4] : memref<1x128xf32, #tpu.memory_space<vmem>>, vector<1x128xf32>
    %3 = vector.extract_strided_slice %1 {offsets = [0, 0], sizes = [32, 96], strides = [1, 1]} : vector<32x128xf32> to vector<32x96xf32>
    %cst = arith.constant dense<0.000000e+00> : vector<16x96xf32>
    %4 = tpu.matmul %0, %3, %cst {dimension_numbers = #tpu.dot_dimension_numbers<[1], [0], [0], [1], [0, 0, 1, 1], [], []>} : vector<16x32xf32>, vector<32x96xf32>, vector<16x96xf32> -> vector<16x96xf32>
    %5 = vector.extract_strided_slice %2 {offsets = [0, 0], sizes = [1, 96], strides = [1, 1]} : vector<1x128xf32> to vector<1x96xf32>
    %6 = vector.broadcast %5 : vector<1x96xf32> to vector<16x96xf32>
    %7 = arith.addf %4, %6 : vector<16x96xf32>
    %8 = vector.extract_strided_slice %7 {offsets = [0, 0], sizes = [16, 8], strides = [1, 1]} : vector<16x96xf32> to vector<16x8xf32>
    %9 = vector.shape_cast %8 : vector<16x8xf32> to vector<2x8x8xf32>
    %10 = vector.extract_strided_slice %7 {offsets = [0, 8], sizes = [16, 8], strides = [1, 1]} : vector<16x96xf32> to vector<16x8xf32>
    %11 = vector.shape_cast %10 : vector<16x8xf32> to vector<2x8x8xf32>
    %12 = vector.extract_strided_slice %7 {offsets = [0, 16], sizes = [16, 8], strides = [1, 1]} : vector<16x96xf32> to vector<16x8xf32>
    %13 = vector.shape_cast %12 : vector<16x8xf32> to vector<2x8x8xf32>
    %14 = vector.extract_strided_slice %7 {offsets = [0, 24], sizes = [16, 8], strides = [1, 1]} : vector<16x96xf32> to vector<16x8xf32>
    %15 = vector.shape_cast %14 : vector<16x8xf32> to vector<2x8x8xf32>
    %16 = tpu.concatenate %9, %11, %13, %15 in 0 : vector<2x8x8xf32>, vector<2x8x8xf32>, vector<2x8x8xf32>, vector<2x8x8xf32> -> vector<8x8x8xf32>
    %17 = vector.extract_strided_slice %7 {offsets = [0, 32], sizes = [16, 8], strides = [1, 1]} : vector<16x96xf32> to vector<16x8xf32>
    %18 = vector.shape_cast %17 : vector<16x8xf32> to vector<2x8x8xf32>
    %19 = vector.extract_strided_slice %7 {offsets = [0, 40], sizes = [16, 8], strides = [1, 1]} : vector<16x96xf32> to vector<16x8xf32>
    %20 = vector.shape_cast %19 : vector<16x8xf32> to vector<2x8x8xf32>
    %21 = vector.extract_strided_slice %7 {offsets = [0, 48], sizes = [16, 8], strides = [1, 1]} : vector<16x96xf32> to vector<16x8xf32>
    %22 = vector.shape_cast %21 : vector<16x8xf32> to vector<2x8x8xf32>
    %23 = vector.extract_strided_slice %7 {offsets = [0, 56], sizes = [16, 8], strides = [1, 1]} : vector<16x96xf32> to vector<16x8xf32>
    %24 = vector.shape_cast %23 : vector<16x8xf32> to vector<2x8x8xf32>
    %25 = tpu.concatenate %18, %20, %22, %24 in 0 : vector<2x8x8xf32>, vector<2x8x8xf32>, vector<2x8x8xf32>, vector<2x8x8xf32> -> vector<8x8x8xf32>
    %26 = vector.extract_strided_slice %7 {offsets = [0, 64], sizes = [16, 8], strides = [1, 1]} : vector<16x96xf32> to vector<16x8xf32>
    %27 = vector.shape_cast %26 : vector<16x8xf32> to vector<2x8x8xf32>
    %28 = vector.extract_strided_slice %7 {offsets = [0, 72], sizes = [16, 8], strides = [1, 1]} : vector<16x96xf32> to vector<16x8xf32>
    %29 = vector.shape_cast %28 : vector<16x8xf32> to vector<2x8x8xf32>
    %30 = vector.extract_strided_slice %7 {offsets = [0, 80], sizes = [16, 8], strides = [1, 1]} : vector<16x96xf32> to vector<16x8xf32>
    %31 = vector.shape_cast %30 : vector<16x8xf32> to vector<2x8x8xf32>
    %32 = vector.extract_strided_slice %7 {offsets = [0, 88], sizes = [16, 8], strides = [1, 1]} : vector<16x96xf32> to vector<16x8xf32>
    %33 = vector.shape_cast %32 : vector<16x8xf32> to vector<2x8x8xf32>
    %34 = tpu.concatenate %27, %29, %31, %33 in 0 : vector<2x8x8xf32>, vector<2x8x8xf32>, vector<2x8x8xf32>, vector<2x8x8xf32> -> vector<8x8x8xf32>
    "tpu.trace_start"() <{level = 10 : i32, message = "nqd,nkd->nqk"}> : () -> ()
    %cst_5 = arith.constant dense<0.000000e+00> : vector<8x8x8xf32>
    %35 = tpu.matmul %16, %25, %cst_5 {dimension_numbers = #tpu.dot_dimension_numbers<[2], [2], [1], [1], [0, 0, 0, 1, 1, 1], [0], [0]>} : vector<8x8x8xf32>, vector<8x8x8xf32>, vector<8x8x8xf32> -> vector<8x8x8xf32>
    "tpu.trace_stop"() : () -> ()
    %cst_6 = arith.constant dense<0xFF800000> : vector<8x8xf32>
    %36 = vector.multi_reduction <maximumf>, %35, %cst_6 [2] : vector<8x8x8xf32> to vector<8x8xf32>
    %37 = vector.shape_cast %36 : vector<8x8xf32> to vector<8x8x1xf32>
    %38 = vector.broadcast %37 : vector<8x8x1xf32> to vector<8x8x8xf32>
    %39 = arith.subf %35, %38 : vector<8x8x8xf32>
    %40 = math.exp %39 : vector<8x8x8xf32>
    %cst_7 = arith.constant dense<0.000000e+00> : vector<8x8xf32>
    %41 = vector.multi_reduction <add>, %40, %cst_7 [2] : vector<8x8x8xf32> to vector<8x8xf32>
    %42 = vector.shape_cast %41 : vector<8x8xf32> to vector<8x8x1xf32>
    "tpu.trace_start"() <{level = 10 : i32, message = "nqk,nkd->nqd"}> : () -> ()
    %cst_8 = arith.constant dense<0.000000e+00> : vector<8x8x8xf32>
    %43 = tpu.matmul %40, %34, %cst_8 {dimension_numbers = #tpu.dot_dimension_numbers<[2], [1], [1], [2], [0, 0, 0, 1, 1, 2], [0], [0]>} : vector<8x8x8xf32>, vector<8x8x8xf32>, vector<8x8x8xf32> -> vector<8x8x8xf32>
    "tpu.trace_stop"() : () -> ()
    %44 = tpu.reciprocal %42 {approx = true} : vector<8x8x1xf32> -> vector<8x8x1xf32>
    %45 = vector.broadcast %44 : vector<8x8x1xf32> to vector<8x8x8xf32>
    %46 = arith.mulf %43, %45 : vector<8x8x8xf32>
    %47 = vector.extract_strided_slice %46 {offsets = [0, 0, 0], sizes = [2, 8, 8], strides = [1, 1, 1]} : vector<8x8x8xf32> to vector<2x8x8xf32>
    %48 = vector.shape_cast %47 : vector<2x8x8xf32> to vector<16x8xf32>
    %49 = vector.extract_strided_slice %46 {offsets = [2, 0, 0], sizes = [2, 8, 8], strides = [1, 1, 1]} : vector<8x8x8xf32> to vector<2x8x8xf32>
    %50 = vector.shape_cast %49 : vector<2x8x8xf32> to vector<16x8xf32>
    %51 = vector.extract_strided_slice %46 {offsets = [4, 0, 0], sizes = [2, 8, 8], strides = [1, 1, 1]} : vector<8x8x8xf32> to vector<2x8x8xf32>
    %52 = vector.shape_cast %51 : vector<2x8x8xf32> to vector<16x8xf32>
    %53 = vector.extract_strided_slice %46 {offsets = [6, 0, 0], sizes = [2, 8, 8], strides = [1, 1, 1]} : vector<8x8x8xf32> to vector<2x8x8xf32>
    %54 = vector.shape_cast %53 : vector<2x8x8xf32> to vector<16x8xf32>
    %55 = tpu.concatenate %48, %50, %52, %54 in 1 : vector<16x8xf32>, vector<16x8xf32>, vector<16x8xf32>, vector<16x8xf32> -> vector<16x32xf32>
    %56 = vector.extract_strided_slice %1 {offsets = [0, 96], sizes = [32, 32], strides = [1, 1]} : vector<32x128xf32> to vector<32x32xf32>
    %cst_9 = arith.constant dense<0.000000e+00> : vector<16x32xf32>
    %57 = tpu.matmul %55, %56, %cst_9 {dimension_numbers = #tpu.dot_dimension_numbers<[1], [0], [0], [1], [0, 0, 1, 1], [], []>} : vector<16x32xf32>, vector<32x32xf32>, vector<16x32xf32> -> vector<16x32xf32>
    %58 = vector.extract_strided_slice %2 {offsets = [0, 96], sizes = [1, 32], strides = [1, 1]} : vector<1x128xf32> to vector<1x32xf32>
    %59 = vector.broadcast %58 : vector<1x32xf32> to vector<16x32xf32>
    %60 = arith.addf %57, %59 : vector<16x32xf32>
    %c0_10 = arith.constant 0 : index
    %c0_11 = arith.constant 0 : index
    %61 = vector.load %arg3[%c0_10, %c0_11] : memref<16x32xf32, #tpu.memory_space<vmem>>, vector<16x32xf32>
    tpu.vector_store %arg3[%c0_10, %c0_11], %60 {strides = array<i32>} : memref<16x32xf32, #tpu.memory_space<vmem>>, vector<16x32xf32>,
    return
  }
}

</mosaic_0001>

<bundles_post_ra>
// kernel: tpu_custom_call.1
= control target key start
LH: loop header
LB: loop body
LE: loop exit
PB: predicated region body
PF: predicated region fallthrough
CT: control target
= control target key end

     0   :  { %8 = vsyncpa [#allocation3], 0  ;;  %s2113_s0 = inlined_call_operand.hbm [shape: f32[16,32], index: 0, kind: input, shape index: {}]   ;;  %s2114_s1 = inlined_call_operand.hbm [shape: f32[32,128], index: 1, kind: input, shape index: {}]   ;;  %s2115_s2 = inlined_call_operand.vmem [shape: f32[1,128], index: 2, kind: input, shape index: {}]   ;;  %s2116_s3 = inlined_call_operand.hbm [shape: f32[16,32], index: 3, kind: output, shape index: {}]  }
   0x1   :  { %9 = vsyncpa [#allocation6], 0 }
   0x2   :  { %10 = vsyncpa [#allocation4], 0  ;;  %s1897_s12 = smov [#allocation2]  }
   0x3   :  { %s16_s13 = sshll.u32 %s1897_s12, 4  ;;  %s17_s13 = int_to_ptr.vmem [resolvable:$true] %s16_s13 }
   0x4   :  { %s1839_s14 = scalar_lea.vmem %s17_s13, 256  ;;  %p1844_p1 = scmp.lt.s32.totalorder %s17_s13, %s17_s13 }
   0x5   :  { %p1840_p0 = scmp.ne.s32.totalorder %s17_s13, %s1839_s14  ;;  %p1845_p2 = scmp.lt.s32.totalorder %s1839_s14, %s1839_s14 }
   0x7   :  { %p1846_p3 = por %p1845_p2, %p1844_p1 }
   0x9   :  { %p1847_p4 = pnand %p1846_p3, %p1840_p0 }
   0xb   :  { %1850 = shalt.err (!%p1847_p4)
}
   0xc   :  { %s1898_s15 = smov 128   ;;  %s1899_s16 = smov 8  }
   0xd   :  { %22 = dma.hbm_to_vmem [thread:$0]  %s2113_s0, 256, %s17_s13, [#allocation3], %s1898_s15, %s1898_s15, %s1899_s16  }
   0xe   :  { %s1900_s19 = smov [#allocation5]  }
   0xf   :  { %s28_s20 = sshll.u32 %s1900_s19, 4  ;;  %s29_s20 = int_to_ptr.vmem [resolvable:$true] %s28_s20 }
  0x10   :  { %s1859_s21 = scalar_lea.vmem %s29_s20, 512  ;;  %p1864_p6 = scmp.lt.s32.totalorder %s29_s20, %s29_s20 }
  0x11   :  { %p1860_p5 = scmp.ne.s32.totalorder %s29_s20, %s1859_s21  ;;  %p1865_p7 = scmp.lt.s32.totalorder %s1859_s21, %s1859_s21 }
  0x13   :  { %p1866_p8 = por %p1865_p7, %p1864_p6 }
  0x15   :  { %p1867_p9 = pnand %p1866_p8, %p1860_p5 }
  0x17   :  { %1870 = shalt.err (!%p1867_p9)
}
  0x18   :  { %34 = dma.hbm_to_vmem [thread:$0]  %s2114_s1, 512, %s29_s20, [#allocation6], %s1898_s15, %s1898_s15, %s1899_s16  }
  0x19   :  { %1891 = dma.done.wait [#allocation3], 256  }
  0x1a   :  { %1892 = vsyncadd [#allocation3], 4294967040 }
  0x1b   :  { %1893 = dma.done.wait [#allocation6], 512  }
  0x1c   :  { %1894 = vsyncadd [#allocation6], 4294966784  ;;  %vm56_vm0 = vcmask 261120   ;;  %v1944_v0 = vld [vmem:[#allocation5 + $0x18] sm:$0xff]  ;;  %v1946_v1 = vld [vmem:[#allocation5 + $0x10] sm:$0xff]  ;;  %v1901_v7 = vmov 0.0  }
  0x1d   :  { %1682 = vmatprep.subr.mxu0 %v1944_v0  ;;  %v43_v2 = vld [vmem:[#allocation2] sm:$0xff]  ;;  %v1950_v3 = vld [vmem:[#allocation5 + $0x8] sm:$0xff]  ;;  %v1955_v4 = vld [vmem:[#allocation5] sm:$0xff]  ;;  %1693 = vmatprep.subr.mxu1 %v1901_v7  ;;  %s1902_s24 = smov 112   ;;  %s1903_s25 = smov 120   ;;  %vm1904_vm1 = vmmov 0  }
  0x1e   :  { %1683 = vmatpush3.msra.mxu0 %v1944_v0  ;;  %1690 = vmatprep.mubr.msk.f32.mxu0 %vm56_vm0, %v43_v2  ;;  %v44_v5 = vld [vmem:[#allocation2 + $0x8] sm:$0xff]  ;;  %v1967_v8 = vld [vmem:[%s2115_s2] ss:$0 sm:$0xff]  ;;  %s1905_s2 = smov 104   ;;  %s1906_s26 = smov 96   ;;  %vm154_vm2 = vcmask 64512  }
  0x1f   :  { %1684 = vmatprep.subr.mxu0 %v1946_v1  ;;  %1695 = vmatprep.mubr.msk.f32.mxu1 %vm1904_vm1, %v1901_v7  ;;  %s1907_s27 = smov 64   ;;  %s1908_s28 = smov 32   ;;  %vm1483_vm3 = vcmask 130048   ;;  %vm1486_vm4 = vcmask 195584  }
  0x20   :  { %1685 = vmatpush3.msra.mxu0 %v1946_v1  ;;  %s1909_s29 = smov 16   ;;  %s1910_s30 = smov 24  }
  0x21   :  { %1686 = vmatprep.subr.mxu0 %v1950_v3  ;;  %s1911_s4 = smov [#allocation7]  }
  0x22   :  { %1687 = vmatpush3.msra.mxu0 %v1950_v3  ;;  %s1596_s5 = sshll.u32 %s1911_s4, 4  ;;  %s1597_s5 = int_to_ptr.vmem [resolvable:$true] %s1596_s5 }
  0x23   :  { %1688 = vmatprep.subr.mxu0 %v1955_v4  ;;  %s1871_s6 = scalar_lea.vmem %s1597_s5, 256  ;;  %p1876_p11 = scmp.lt.s32.totalorder %s1597_s5, %s1597_s5 }
  0x24   :  { %1689 = vmatpush3.msra.mxu0 %v1955_v4  ;;  %p1872_p10 = scmp.ne.s32.totalorder %s1597_s5, %s1871_s6  ;;  %p1877_p12 = scmp.lt.s32.totalorder %s1871_s6, %s1871_s6 }
  0x25   :  { %1691 = vmatmul.mubr.msk.f32.vlgmr.msra.gmra.mxu0 %vm56_vm0, %v44_v5  ;;  %1713 = vmatprep.subr.mxu0 %v1901_v7 }
  0x26   :  { %1715 = vmatprep.mubr.msk.f32.mxu0 %vm1904_vm1, %v1901_v7  ;;  %p1878_p13 = por %p1877_p12, %p1876_p11 }
  0x28   :  { %p1879_p0 = pnand %p1878_p13, %p1872_p10 }
  0xe5   :  { %v1692_v6 = vpop.f32.mrf.mxu0 }
  0xe6   :  { %v135_v11 = vadd.f32 %v1692_v6, %v1967_v8 }
  0xe7   :  { %v129_v9 = vpop.f32.mrf.mxu0 }
  0xe8   :  { %v130_v10 = vadd.f32 %v1967_v8, %v129_v9 }
  0xea   :  { %144 = vrot.lane.b32.xlu1 %v130_v10, %s1902_s24  ;;  %140 = vrot.lane.b32.xlu0 %v130_v10, %s1903_s25 }
  0xee   :  { %146 = vrot.lane.b32.xlu1 %v135_v11, %s1902_s24  ;;  %142 = vrot.lane.b32.xlu0 %v135_v11, %s1903_s25 }
  0xf2   :  { %150 = vrot.lane.b32.xlu1 %v135_v11, %s1905_s2  ;;  %148 = vrot.lane.b32.xlu0 %v130_v10, %s1905_s2 }
  0xf6   :  { %229 = vrot.lane.b32.xlu1 %v135_v11, %s1906_s26  ;;  %152 = vrot.lane.b32.xlu0 %v130_v10, %s1906_s26 }
 0x15c   :  { %v145_v12 = vpop.permute.xlu1 %144  ;;  %v141_v13 = vpop.permute.xlu0 %140 }
 0x15d   :  { %305 = vrot.lane.b32.xlu0 %v141_v13, %s1906_s26 }
 0x160   :  { %v143_v14 = vpop.permute.xlu0 %142  ;;  %v147_v15 = vpop.permute.xlu1 %146 }
 0x161   :  { %457 = vrot.lane.b32.xlu0 %v145_v12, %s1906_s26  ;;  %381 = vrot.lane.b32.xlu1 %v143_v14, %s1906_s26 }
 0x164   :  { %v1975_v16 = vpop.permute.xlu0 %148  ;;  %v1978_v17 = vpop.permute.xlu1 %150 }
 0x165   :  { %533 = vrot.lane.b32.xlu1 %v147_v15, %s1906_s26  ;;  %609 = vrot.lane.b32.xlu0 %v1975_v16, %s1906_s26 }
 0x168   :  { %v153_v18 = vpop.permute.xlu0 %152  ;;  %v230_v19 = vpop.permute.xlu1 %229 }
 0x169   :  { %685 = vrot.lane.b32.xlu1 %v1978_v17, %s1906_s26  ;;  %909 = vrot.lane.b32.xlu0 %v135_v11, %s1907_s27 }
 0x16a   :  { %1694 = vmatpush3.xpose.msk.msra.mxu1 %vm154_vm2, %v153_v18 }
 0x16b   :  { %1698 = vmatprep.subr.mxu1 %v1901_v7 }
 0x16d   :  { %1696 = vmatmul.mubr.msk.f32.vlgmr.msra.gmra.mxu1 %vm154_vm2, %v130_v10  ;;  %833 = vrot.lane.b32.xlu1 %v130_v10, %s1907_s27 }
 0x16e   :  { %1137 = vrot.lane.b32.xlu0 %v145_v12, %s1907_s27  ;;  %1699 = vmatpush3.xpose.msk.msra.mxu1 %vm154_vm2, %v230_v19 }
 0x16f   :  { %1700 = vmatprep.mubr.msk.f32.mxu1 %vm1904_vm1, %v1901_v7  ;;  %1703 = vmatprep.subr.mxu1 %v1901_v7 }
 0x171   :  { %1701 = vmatmul.mubr.msk.f32.vlgmr.msra.gmra.mxu1 %vm154_vm2, %v135_v11  ;;  %1061 = vrot.lane.b32.xlu1 %v143_v14, %s1907_s27 }
 0x172   :  { %1705 = vmatprep.mubr.msk.f32.mxu1 %vm1904_vm1, %v1901_v7 }
 0x175   :  { %1213 = vrot.lane.b32.xlu1 %v147_v15, %s1907_s27 }
 0x179   :  { %985 = vrot.lane.b32.xlu1 %v141_v13, %s1907_s27 }
 0x1cf   :  { %v306_v20 = vpop.permute.xlu0 %305 }
 0x1d0   :  { %1704 = vmatpush3.xpose.msk.msra.mxu1 %vm154_vm2, %v306_v20 }
 0x1d1   :  { %1708 = vmatprep.subr.mxu1 %v1901_v7 }
 0x1d3   :  { %v382_v21 = vpop.permute.xlu1 %381  ;;  %1706 = vmatmul.mubr.msk.f32.vlgmr.msra.gmra.mxu1 %vm154_vm2, %v141_v13  ;;  %v458_v22 = vpop.permute.xlu0 %457 }
 0x1d4   :  { %1709 = vmatpush3.xpose.msk.msra.mxu1 %vm154_vm2, %v382_v21  ;;  %1714 = vmatpush3.xpose.msk.msra.mxu0 %vm154_vm2, %v458_v22 }
 0x1d5   :  { %1710 = vmatprep.mubr.msk.f32.mxu1 %vm1904_vm1, %v1901_v7  ;;  %1718 = vmatprep.subr.mxu1 %v1901_v7 }
 0x1d6   :  { %1723 = vmatprep.subr.mxu0 %v1901_v7 }
 0x1d7   :  { %v534_v23 = vpop.permute.xlu1 %533  ;;  %1711 = vmatmul.mubr.msk.f32.vlgmr.msra.gmra.mxu1 %vm154_vm2, %v143_v14  ;;  %1716 = vmatmul.mubr.msk.f32.vlgmr.msra.gmra.mxu0 %vm154_vm2, %v145_v12  ;;  %v610_v24 = vpop.permute.xlu0 %609 }
 0x1d8   :  { %1719 = vmatpush3.xpose.msk.msra.mxu1 %vm154_vm2, %v534_v23  ;;  %1724 = vmatpush3.xpose.msk.msra.mxu0 %vm154_vm2, %v610_v24 }
 0x1d9   :  { %1720 = vmatprep.mubr.msk.f32.mxu1 %vm1904_vm1, %v1901_v7  ;;  %1725 = vmatprep.mubr.msk.f32.mxu0 %vm1904_vm1, %v1901_v7 }
 0x1da   :  { %1728 = vmatprep.subr.mxu1 %v1901_v7  ;;  %1733 = vmatprep.subr.mxu0 %v1901_v7 }
 0x1db   :  { %v686_v25 = vpop.permute.xlu1 %685  ;;  %1721 = vmatmul.mubr.msk.f32.vlgmr.msra.gmra.mxu1 %vm154_vm2, %v147_v15  ;;  %1726 = vmatmul.mubr.msk.f32.vlgmr.msra.gmra.mxu0 %vm154_vm2, %v1975_v16  ;;  %v910_v26 = vpop.permute.xlu0 %909 }
 0x1dc   :  { %1729 = vmatpush3.xpose.msk.msra.mxu1 %vm154_vm2, %v686_v25  ;;  %1730 = vmatprep.mubr.msk.f32.mxu1 %vm1904_vm1, %v1901_v7 }
 0x1dd   :  { %1738 = vmatprep.subr.mxu1 %v1901_v7  ;;  %1735 = vmatprep.mubr.msk.f32.mxu0 %vm1904_vm1, %v1901_v7 }
 0x1df   :  { %v834_v27 = vpop.permute.xlu1 %833  ;;  %1731 = vmatmul.mubr.msk.f32.vlgmr.msra.gmra.mxu1 %vm154_vm2, %v1978_v17 }
 0x1e0   :  { %1734 = vmatpush3.msra.mxu0 %v834_v27  ;;  %1739 = vmatpush3.msra.mxu1 %v910_v26  ;;  %v1138_v54 = vpop.permute.xlu0 %1137 }
 0x1e1   :  { %1743 = vmatprep.subr.mxu0 %v1901_v7  ;;  %1740 = vmatprep.mubr.msk.f32.mxu1 %vm1904_vm1, %v1901_v7 }
 0x1e2   :  { %1748 = vmatprep.subr.mxu1 %v1901_v7 }
 0x1e3   :  { %v1062_v52 = vpop.permute.xlu1 %1061 }
 0x1e7   :  { %v1214_v53 = vpop.permute.xlu1 %1213 }
 0x1eb   :  { %v986_v55 = vpop.permute.xlu1 %985 }
 0x22d   :  { %v225_v28 = vpop.f32.mrf.mxu1 }
 0x22e   :  { %v761_v29 = vsel %vm154_vm2, %v225_v28, -inf }
 0x22f   :  { %762 = vmax.xlane.f32.xlu0 %v761_v29  ;;  %v1697_v30 = vpop.f32.mrf.mxu1 }
 0x231   :  { %v301_v31 = vpop.f32.mrf.mxu1 }
 0x232   :  { %v764_v32 = vsel %vm154_vm2, %v301_v31, -inf }
 0x233   :  { %765 = vmax.xlane.f32.xlu1 %v764_v32  ;;  %v1702_v33 = vpop.f32.mrf.mxu1 }
 0x293   :  { %v377_v34 = vpop.f32.mrf.mxu1 }
 0x294   :  { %v767_v35 = vsel %vm154_vm2, %v377_v34, -inf }
 0x295   :  { %768 = vmax.xlane.f32.xlu0 %v767_v35  ;;  %v1707_v36 = vpop.f32.mrf.mxu1 }
 0x297   :  { %v453_v37 = vpop.f32.mrf.mxu1  ;;  %v529_v38 = vpop.f32.mrf.mxu0 }
 0x298   :  { %v770_v39 = vsel %vm154_vm2, %v453_v37, -inf  ;;  %v773_v40 = vsel %vm154_vm2, %v529_v38, -inf }
 0x299   :  { %771 = vmax.xlane.f32.xlu0 %v770_v39  ;;  %v1712_v41 = vpop.f32.mrf.mxu1  ;;  %774 = vmax.xlane.f32.xlu1 %v773_v40  ;;  %v1717_v42 = vpop.f32.mrf.mxu0 }
 0x29b   :  { %v605_v43 = vpop.f32.mrf.mxu1  ;;  %v681_v44 = vpop.f32.mrf.mxu0 }
 0x29c   :  { %v776_v45 = vsel %vm154_vm2, %v605_v43, -inf  ;;  %v779_v46 = vsel %vm154_vm2, %v681_v44, -inf }
 0x29d   :  { %777 = vmax.xlane.f32.xlu0 %v776_v45  ;;  %v1722_v47 = vpop.f32.mrf.mxu1  ;;  %780 = vmax.xlane.f32.xlu1 %v779_v46  ;;  %v1727_v48 = vpop.f32.mrf.mxu0 }
 0x29f   :  { %v757_v49 = vpop.f32.mrf.mxu1 }
 0x2a0   :  { %v782_v50 = vsel %vm154_vm2, %v757_v49, -inf }
 0x2a1   :  { %783 = vmax.xlane.f32.xlu0 %v782_v50  ;;  %v1732_v51 = vpop.f32.mrf.mxu1 }
 0x2ae   :  { %1365 = vrot.lane.b32.xlu1 %v1978_v17, %s1907_s27 }
 0x2b7   :  { %1289 = vrot.lane.b32.xlu0 %v1975_v16, %s1907_s27 }
 0x2b8   :  { %v763_v56 = vpop.xlane.xlu0 %762 }
 0x2b9   :  { %v785_v57 = vsub.f32 %v225_v28, %v763_v56 }
 0x2bb   :  { %v793_v58 = vmul.f32 1.442695, %v785_v57 }
 0x2bc   :  { %v766_v59 = vpop.xlane.xlu1 %765 }
 0x2bd   :  { %1799 = vpow2.f32 %v793_v58  ;;  %v786_v60 = vsub.f32 %v301_v31, %v766_v59 }
 0x2bf   :  { %v795_v61 = vmul.f32 1.442695, %v786_v60 }
 0x2c1   :  { %1801 = vpow2.f32 %v795_v61 }
 0x2ca   :  { %v2043_v62 = vpop.eup %1799 }
 0x2cb   :  { %1736 = vmatmul.mubr.msk.f32.vlgmr.msra.gmra.mxu0 %vm154_vm2, %v2043_v62 }
 0x2cc   :  { %1744 = vmatpush3.msra.mxu0 %v986_v55  ;;  %1745 = vmatprep.mubr.msk.f32.mxu0 %vm1904_vm1, %v1901_v7 }
 0x2cd   :  { %1753 = vmatprep.subr.mxu0 %v1901_v7 }
 0x2ce   :  { %v2050_v63 = vpop.eup %1801 }
 0x2cf   :  { %1741 = vmatmul.mubr.msk.f32.vlgmr.msra.gmra.mxu1 %vm154_vm2, %v2050_v63  ;;  %v812_v39 = vsel %vm154_vm2, %v2050_v63, 0.0 }
 0x2d0   :  { %1749 = vmatpush3.msra.mxu1 %v1062_v52  ;;  %1750 = vmatprep.mubr.msk.f32.mxu1 %vm1904_vm1, %v1901_v7 }
 0x2d1   :  { %1758 = vmatprep.subr.mxu1 %v1901_v7 }
 0x31e   :  { %v769_v2 = vpop.xlane.xlu0 %768 }
 0x31f   :  { %v787_v5 = vsub.f32 %v377_v34, %v769_v2 }
 0x321   :  { %v797_v6 = vmul.f32 1.442695, %v787_v5 }
 0x322   :  { %v775_v9 = vpop.xlane.xlu1 %774  ;;  %v772_v10 = vpop.xlane.xlu0 %771 }
 0x323   :  { %1803 = vpow2.f32 %v797_v6  ;;  %v789_v11 = vsub.f32 %v529_v38, %v775_v9  ;;  %v788_v12 = vsub.f32 %v453_v37, %v772_v10  ;;  %v809_v38 = vsel %vm154_vm2, %v2043_v62, 0.0 }
 0x325   :  { %v801_v13 = vmul.f32 1.442695, %v789_v11  ;;  %v799_v14 = vmul.f32 1.442695, %v788_v12 }
 0x326   :  { %v781_v15 = vpop.xlane.xlu1 %780  ;;  %v778_v16 = vpop.xlane.xlu0 %777 }
 0x327   :  { %1805 = vpow2.f32 %v801_v13  ;;  %v791_v17 = vsub.f32 %v681_v44, %v781_v15  ;;  %v790_v18 = vsub.f32 %v605_v43, %v778_v16 }
 0x328   :  { %1807 = vpow2.f32 %v799_v14 }
 0x329   :  { %v805_v19 = vmul.f32 1.442695, %v791_v17  ;;  %v803_v20 = vmul.f32 1.442695, %v790_v18 }
 0x32a   :  { %v784_v21 = vpop.xlane.xlu0 %783  ;;  %v1366_v34 = vpop.permute.xlu1 %1365 }
 0x32b   :  { %1809 = vpow2.f32 %v805_v19  ;;  %v792_v22 = vsub.f32 %v757_v49, %v784_v21 }
 0x32c   :  { %1811 = vpow2.f32 %v803_v20 }
 0x32d   :  { %v807_v23 = vmul.f32 1.442695, %v792_v22 }
 0x32e   :  { %v1290_v28 = vpop.permute.xlu0 %1289 }
 0x32f   :  { %1813 = vpow2.f32 %v807_v23 }
 0x330   :  { %v1804_v24 = vpop.eup %1803 }
 0x331   :  { %1746 = vmatmul.mubr.msk.f32.vlgmr.msra.gmra.mxu0 %vm154_vm2, %v1804_v24  ;;  %v815_v25 = vsel %vm154_vm2, %v1804_v24, 0.0 }
 0x332   :  { %1754 = vmatpush3.msra.mxu0 %v1138_v54  ;;  %816 = vadd.xlane.f32.xlu0 %v815_v25 }
 0x333   :  { %1755 = vmatprep.mubr.msk.f32.mxu0 %vm1904_vm1, %v1901_v7  ;;  %1763 = vmatprep.subr.mxu0 %v1901_v7 }
 0x334   :  { %v1806_v26 = vpop.eup %1805 }
 0x335   :  { %v1808_v27 = vpop.eup %1807  ;;  %1756 = vmatmul.mubr.msk.f32.vlgmr.msra.gmra.mxu0 %vm154_vm2, %v1806_v26  ;;  %v821_v29 = vsel %vm154_vm2, %v1806_v26, 0.0 }
 0x336   :  { %1751 = vmatmul.mubr.msk.f32.vlgmr.msra.gmra.mxu1 %vm154_vm2, %v1808_v27  ;;  %1764 = vmatpush3.msra.mxu0 %v1290_v28  ;;  %v818_v30 = vsel %vm154_vm2, %v1808_v27, 0.0 }
 0x337   :  { %1759 = vmatpush3.msra.mxu1 %v1214_v53  ;;  %822 = vadd.xlane.f32.xlu0 %v821_v29 }
 0x338   :  { %v1810_v31 = vpop.eup %1809  ;;  %819 = vadd.xlane.f32.xlu1 %v818_v30  ;;  %1760 = vmatprep.mubr.msk.f32.mxu1 %vm1904_vm1, %v1901_v7 }
 0x339   :  { %v1812_v32 = vpop.eup %1811  ;;  %1765 = vmatprep.mubr.msk.f32.mxu0 %vm1904_vm1, %v1901_v7  ;;  %1768 = vmatprep.subr.mxu1 %v1901_v7  ;;  %v827_v33 = vsel %vm154_vm2, %v1810_v31, 0.0 }
 0x33a   :  { %1761 = vmatmul.mubr.msk.f32.vlgmr.msra.gmra.mxu1 %vm154_vm2, %v1812_v32  ;;  %1766 = vmatmul.mubr.msk.f32.vlgmr.msra.gmra.mxu0 %vm154_vm2, %v1810_v31  ;;  %v824_v35 = vsel %vm154_vm2, %v1812_v32, 0.0 }
 0x33b   :  { %1769 = vmatpush3.msra.mxu1 %v1366_v34  ;;  %825 = vadd.xlane.f32.xlu0 %v824_v35 }
 0x33c   :  { %v1814_v36 = vpop.eup %1813  ;;  %828 = vadd.xlane.f32.xlu1 %v827_v33  ;;  %1770 = vmatprep.mubr.msk.f32.mxu1 %vm1904_vm1, %v1901_v7 }
 0x33d   :  { %v830_v37 = vsel %vm154_vm2, %v1814_v36, 0.0 }
 0x33e   :  { %1771 = vmatmul.mubr.msk.f32.vlgmr.msra.gmra.mxu1 %vm154_vm2, %v1814_v36 }
 0x33f   :  { %831 = vadd.xlane.f32.xlu0 %v830_v37 }
 0x340   :  { %810 = vadd.xlane.f32.xlu1 %v809_v38 }
 0x343   :  { %813 = vadd.xlane.f32.xlu0 %v812_v39 }
 0x351   :  { %1499 = vrot.lane.b32.xlu1 %v1944_v0, %s1908_s28 }
 0x355   :  { %1495 = vrot.lane.b32.xlu1 %v1950_v3, %s1908_s28 }
 0x359   :  { %1497 = vrot.lane.b32.xlu0 %v1946_v1, %s1908_s28 }
 0x38b   :  { %v2089_v7 = vpop.f32.mrf.mxu0 }
 0x38d   :  { %v1737_v40 = vpop.f32.mrf.mxu0 }
 0x38f   :  { %v2091_v41 = vpop.f32.mrf.mxu1 }
 0x391   :  { %v1742_v42 = vpop.f32.mrf.mxu1 }
 0x3bb   :  { %v817_v43 = vpop.xlane.xlu0 %816 }
 0x3bc   :  { %1815 = vrcp.f32 %v817_v43 }
 0x3c0   :  { %v823_v44 = vpop.xlane.xlu0 %822 }
 0x3c1   :  { %v820_v45 = vpop.xlane.xlu1 %819  ;;  %1817 = vrcp.f32 %v823_v44 }
 0x3c2   :  { %1819 = vrcp.f32 %v820_v45 }
 0x3c4   :  { %v826_v46 = vpop.xlane.xlu0 %825 }
 0x3c5   :  { %v829_v47 = vpop.xlane.xlu1 %828  ;;  %1821 = vrcp.f32 %v826_v46 }
 0x3c6   :  { %1823 = vrcp.f32 %v829_v47 }
 0x3c8   :  { %v832_v48 = vpop.xlane.xlu0 %831 }
 0x3c9   :  { %v811_v49 = vpop.xlane.xlu1 %810  ;;  %v1816_v1 = vpop.eup %1815  ;;  %1825 = vrcp.f32 %v832_v48 }
 0x3ca   :  { %1827 = vrcp.f32 %v811_v49 }
 0x3cc   :  { %v814_v0 = vpop.xlane.xlu0 %813 }
 0x3cd   :  { %v1500_v50 = vpop.permute.xlu1 %1499  ;;  %1829 = vrcp.f32 %v814_v0 }
 0x3ce   :  { %1773 = vmatprep.subr.mxu0 %v1500_v50  ;;  %v1818_v55 = vpop.eup %1817 }
 0x3cf   :  { %1774 = vmatpush3.msra.mxu0 %v1500_v50  ;;  %v1820_v57 = vpop.eup %1819 }
 0x3d0   :  { %v1498_v3 = vpop.permute.xlu0 %1497 }
 0x3d1   :  { %v1496_v51 = vpop.permute.xlu1 %1495  ;;  %1775 = vmatprep.subr.mxu0 %v1498_v3 }
 0x3d2   :  { %1776 = vmatpush3.msra.mxu0 %v1498_v3  ;;  %v1822_v63 = vpop.eup %1821 }
 0x3d3   :  { %1777 = vmatprep.subr.mxu0 %v1496_v51  ;;  %v1824_v2 = vpop.eup %1823 }
 0x3d4   :  { %1778 = vmatpush3.msra.mxu0 %v1496_v51 }
 0x3d6   :  { %v1826_v13 = vpop.eup %1825 }
 0x3d7   :  { %v1828_v18 = vpop.eup %1827 }
 0x3d8   :  { %v1449_v21 = vmul.f32 %v1828_v18, %v2089_v7 }
 0x3da   :  { %v1830_v22 = vpop.eup %1829 }
 0x3db   :  { %v1450_v26 = vmul.f32 %v1830_v22, %v2091_v41 }
 0x3f1   :  { %v1057_v52 = vpop.f32.mrf.mxu0 }
 0x3f2   :  { %v1451_v53 = vmul.f32 %v1816_v1, %v1057_v52 }
 0x3f3   :  { %v1747_v54 = vpop.f32.mrf.mxu0 }
 0x3f4   :  { %1459 = vrot.lane.b32.xlu1 %v1451_v53, %s1899_s16 }
 0x3f5   :  { %v1209_v56 = vpop.f32.mrf.mxu0 }
 0x3f6   :  { %v1133_v58 = vpop.f32.mrf.mxu1  ;;  %v1453_v59 = vmul.f32 %v1818_v55, %v1209_v56 }
 0x3f7   :  { %v1452_v60 = vmul.f32 %v1820_v57, %v1133_v58  ;;  %v1757_v61 = vpop.f32.mrf.mxu0 }
 0x3f8   :  { %v1752_v62 = vpop.f32.mrf.mxu1  ;;  %1467 = vrot.lane.b32.xlu1 %v1453_v59, %s1909_s29 }
 0x3f9   :  { %1461 = vrot.lane.b32.xlu0 %v1452_v60, %s1899_s16 }
 0x3fa   :  { %v1285_v5 = vpop.f32.mrf.mxu1  ;;  %v1361_v6 = vpop.f32.mrf.mxu0 }
 0x3fb   :  { %v1454_v9 = vmul.f32 %v1822_v63, %v1285_v5  ;;  %v1455_v10 = vmul.f32 %v1824_v2, %v1361_v6 }
 0x3fc   :  { %v1762_v11 = vpop.f32.mrf.mxu1  ;;  %v1767_v12 = vpop.f32.mrf.mxu0 }
 0x3fd   :  { %1475 = vrot.lane.b32.xlu1 %v1455_v10, %s1910_s30  ;;  %1469 = vrot.lane.b32.xlu0 %v1454_v9, %s1909_s29 }
 0x3fe   :  { %v1437_v14 = vpop.f32.mrf.mxu1 }
 0x3ff   :  { %v1456_v15 = vmul.f32 %v1826_v13, %v1437_v14 }
 0x400   :  { %v1772_v16 = vpop.f32.mrf.mxu1 }
 0x401   :  { %1493 = vrot.lane.b32.xlu0 %v1955_v4, %s1908_s28  ;;  %1477 = vrot.lane.b32.xlu1 %v1456_v15, %s1910_s30 }
 0x405   :  { %1505 = vrot.lane.b32.xlu0 %v1967_v8, %s1908_s28 }
 0x466   :  { %v1460_v17 = vpop.permute.xlu1 %1459 }
 0x467   :  { %v1481_v23 = vsel %vm154_vm2, %v1449_v21, %v1460_v17 }
 0x46a   :  { %v1468_v19 = vpop.permute.xlu1 %1467 }
 0x46b   :  { %v1462_v20 = vpop.permute.xlu0 %1461  ;;  %v1484_v24 = vsel %vm1483_vm3, %v1481_v23, %v1468_v19 }
 0x46c   :  { %v1482_v8 = vsel %vm154_vm2, %v1450_v26, %v1462_v20 }
 0x46f   :  { %v1476_v25 = vpop.permute.xlu1 %1475  ;;  %v1470_v4 = vpop.permute.xlu0 %1469 }
 0x470   :  { %v1487_v27 = vsel %vm1486_vm4, %v1484_v24, %v1476_v25  ;;  %v1485_v28 = vsel %vm1483_vm3, %v1482_v8, %v1470_v4 }
 0x471   :  { %1781 = vmatprep.mubr.msk.f32.mxu0 %vm56_vm0, %v1487_v27 }
 0x473   :  { %v1478_v29 = vpop.permute.xlu1 %1477  ;;  %v1494_v30 = vpop.permute.xlu0 %1493 }
 0x474   :  { %v1488_v31 = vsel %vm1486_vm4, %v1485_v28, %v1478_v29  ;;  %1779 = vmatprep.subr.mxu0 %v1494_v30 }
 0x475   :  { %1780 = vmatpush3.msra.mxu0 %v1494_v30 }
 0x476   :  { %1782 = vmatmul.mubr.msk.f32.vlgmr.msra.gmra.mxu0 %vm56_vm0, %v1488_v31 }
 0x477   :  { %v1506_v32 = vpop.permute.xlu0 %1505 }
 0x536   :  { %v1783_v33 = vpop.f32.mrf.mxu0 }
 0x537   :  { %v1586_v34 = vadd.f32 %v1783_v33, %v1506_v32 }
 0x538   :  { %v1580_v35 = vpop.f32.mrf.mxu0 }
 0x539   :  { %1590 = vst.msk [vmem:[#allocation7 + $0x8] sm:$0xff] %vm56_vm0, %v1586_v34  ;;  %v1581_v36 = vadd.f32 %v1580_v35, %v1506_v32 }
 0x53b   :  { %1589 = vst.msk [vmem:[#allocation7] sm:$0xff] %vm56_vm0, %v1581_v36 }
 0x53c   :  { %1882 = shalt.err (!%p1879_p0)
}
 0x53d   :  { %1602 = dma.vmem_to_hbm [thread:$0]  %s1597_s5, 256, %s2116_s3, [#allocation4], %s1898_s15, %s1898_s15, %s1899_s16  }
 0x53e   :  { %1895 = dma.done.wait [#allocation4], 256  }
 0x53f   :  { %1896 = vsyncadd [#allocation4], 4294967040 }
 0x540   :  { %1606 = vsyncpa [#allocation3], 1 }
 0x541   :  { %1607 = vsyncpa [#allocation6], 1 }
 0x542   :  { %1608 = vsyncpa [#allocation4], 1 }

</bundles_post_ra>
